<compile_context>
chip_gen: v6e
topology: v6e:2x2x1
jax: 0.10.0
libtpu: 0.0.40
codegen_flags: <defaults>
</compile_context>

<pallas_src>
import jax
import jax.numpy as jnp
from jax.experimental import pallas as pl
from jax.experimental.pallas import tpu as pltpu


# ----------------------------- kernel ------------------------------------- #
def _traj_encoder_kernel(x_ref, w1p_ref, b1_ref, w2_ref, b2_ref, out_ref):
    """Fused [W1 || Wskip] matmul -> leaky_relu(0.25) -> W2 matmul -> +skip.

    w1p_ref : [d_in, 2*d_pad]  cols [:d_pad] = W1, cols [d_pad:] = Wp (or a
              zero-padded identity when the skip is x itself).
    b1_ref  : [1, d_pad]   first-linear bias (f32).
    w2_ref  : [d_pad, d_pad] second linear (zero-padded).
    b2_ref  : [1, d_pad]   second-linear bias (f32).
    out_ref : [tm, d_out]  natural (unpadded) output width.
    """
    d_pad = w2_ref.shape[-1]                     # padded hidden width (x128)
    d_out = out_ref.shape[-1]
    x = x_ref[...].astype(w1p_ref.dtype)
    z = jnp.dot(x, w1p_ref[...], preferred_element_type=jnp.float32)
    pre = z[:, :d_pad] + b1_ref[...]             # first linear pre-activation
    skip = z[:, d_pad:]                          # projection / identity skip
    h = jnp.where(pre >= 0.0, pre, 0.25 * pre)   # leaky_relu, slope 0.25 (f32)
    y = jnp.dot(h.astype(w2_ref.dtype), w2_ref[...],
                preferred_element_type=jnp.float32) + b2_ref[...]
    out_ref[...] = (y + skip)[:, :d_out].astype(out_ref.dtype)


# ----------------------------- helpers ------------------------------------ #
def _round_up(x, m):
    return ((x + m - 1) // m) * m


def _pad_cols(a, target):
    pad = target - a.shape[-1]
    if pad:
        a = jnp.pad(a, [(0, 0)] * (a.ndim - 1) + [(0, pad)])
    return a


_HAS_BUFFERED = hasattr(pl, "Buffered")


def _spec(shape, index_map, bufs=None):
    """BlockSpec with an optional pipeline-depth hint (graceful fallback)."""
    if bufs is not None and _HAS_BUFFERED:
        try:
            return pl.BlockSpec(shape, index_map, pipeline_mode=pl.Buffered(bufs))
        except TypeError:            # older BlockSpec without pipeline_mode
            pass
    return pl.BlockSpec(shape, index_map)


def init_params(key, traj_encoder_obs_dim, output_dim, dtype=jnp.float32):
    """Deterministic synthetic parameters (nn.Linear weights stored [in, out])."""
    k1, k2, k3, k4, k5 = jax.random.split(key, 5)
    w1 = jax.random.normal(k1, (traj_encoder_obs_dim, output_dim), dtype) * 0.1
    b1 = jax.random.normal(k2, (1, output_dim), dtype) * 0.1
    w2 = jax.random.normal(k3, (output_dim, output_dim), dtype) * 0.1
    b2 = jax.random.normal(k4, (1, output_dim), dtype) * 0.1
    params = {"w1": w1, "b1": b1, "w2": w2, "b2": b2}
    if traj_encoder_obs_dim != output_dim:
        params["wp"] = jax.random.normal(
            k5, (traj_encoder_obs_dim, output_dim), dtype) * 0.1
    return params


# ----------------------------- wrapper ------------------------------------ #
def traj_encoder_skip_conn(x, params, *, block_m=None, weights_dtype=None):
    """Returns (mean, stddev), mirroring the PyTorch Dummy(out) return.

    Callers with a time / trajectory axis should flatten to [B*T, d_in] before
    calling so one large batched pallas_call amortizes launch + DMA overhead.
    """
    unsqueezed = x.ndim == 1
    if unsqueezed:
        x = x[None, :]
    B, d_in = x.shape
    d_out = params["w1"].shape[1]
    dtype = x.dtype
    act_bytes = jnp.dtype(dtype).itemsize

    # Padded hidden width: 128-aligned so the fused-result split and all
    # internal compute stay lane-aligned.  Output stays at its natural width.
    d_pad = _round_up(d_out, 128)

    # --- parameters (padded once; zero rows/cols are inert) ---------------- #
    w_dtype = weights_dtype if weights_dtype is not None else params["w1"].dtype
    w1 = _pad_cols(params["w1"], d_pad)
    if "wp" in params:
        wskip = params["wp"]
    else:
        # identity skip folded into the same fused matmul (x stays unpadded)
        wskip = jnp.eye(d_in, d_out, dtype=params["w1"].dtype)
    wskip = _pad_cols(wskip, d_pad)
    w1p = jnp.concatenate([w1, wskip], axis=1).astype(w_dtype)    # [d_in, 2*d_pad]
    w2 = jnp.pad(params["w2"],
                 ((0, d_pad - d_out), (0, d_pad - d_out))).astype(w_dtype)
    b1 = _pad_cols(params["b1"], d_pad).astype(jnp.float32)
    b2 = _pad_cols(params["b2"], d_pad).astype(jnp.float32)
    w_bytes = sum(int(a.size) * a.dtype.itemsize for a in (w1p, b1, w2, b2))

    # --- batch tile --------------------------------------------------------- #
    b8 = _round_up(B, 8)
    if block_m is None:
        # size the streamed (x triple-buffered + out double-buffered) tiles to ~8 MiB
        per_row = (3 * d_in + 2 * d_out) * act_bytes
        tm = (8 << 20) // max(per_row, 1)
    else:
        tm = block_m
    tm = max(8, min(tm, 8192, b8))
    tm = (tm // 8) * 8
    if b8 >= 16:
        # guarantee >= 2 grid steps so the "parallel" batch axis can be split
        # across v7x's two TensorCores (no effect on single-TC v5e/v6e)
        tm = min(tm, _round_up((b8 + 1) // 2, 8))
    b_pad = _round_up(B, tm)
    n_steps = b_pad // tm
    grid = (n_steps,)

    x_in = x if b_pad == B else jnp.pad(x, ((0, b_pad - B), (0, 0)))
    x_bufs = 3 if n_steps >= 3 else None

    # --- VMEM budget (capacity-aware, with headroom for compiler scratch) --- #
    try:
        vmem_cap = int(pltpu.get_tpu_info().vmem_capacity_bytes)
    except Exception:                    # interpret mode / older jax
        vmem_cap = 64 << 20
    budget = ((3 * d_in + 2 * d_out) * tm * act_bytes   # streamed x/out tiles
              + 2 * w_bytes                             # resident weights (worst case)
              + (4 << 20))                              # margin
    vmem_limit = int(min(max(budget, 16 << 20), max(vmem_cap - (8 << 20), 32 << 20)))
    # TODO(synk): for very large d_out (w2 ~ d_pad^2 > ~40 MiB, v7x 64 MiB VMEM)
    # add a grid axis tiling w2 over N/K instead of keeping it fully resident.

    cost = pl.CostEstimate(
        flops=2 * b_pad * (d_in * 2 * d_pad + d_pad * d_pad),
        transcendentals=0,
        bytes_accessed=act_bytes * (int(x_in.size) + b_pad * d_out) + w_bytes,
    )
    out_shape = jax.ShapeDtypeStruct((b_pad, d_out), dtype)
    out_spec = pl.BlockSpec((tm, d_out), lambda i: (i, 0))

    def _call(use_hints):
        in_specs = [
            _spec((tm, d_in), lambda i: (i, 0), x_bufs if use_hints else None),
            _spec(w1p.shape, lambda i: (0, 0), 1 if use_hints else None),
            _spec(b1.shape, lambda i: (0, 0), 1 if use_hints else None),
            _spec(w2.shape, lambda i: (0, 0), 1 if use_hints else None),
            _spec(b2.shape, lambda i: (0, 0), 1 if use_hints else None),
        ]
        return pl.pallas_call(
            _traj_encoder_kernel,
            out_shape=out_shape,
            grid=grid,
            in_specs=in_specs,
            out_specs=out_spec,
            compiler_params=pltpu.CompilerParams(
                dimension_semantics=("parallel",),
                vmem_limit_bytes=vmem_limit,
            ),
            cost_estimate=cost,
        )(x_in, w1p, b1, w2, b2)

    try:
        out = _call(True)
    except Exception:
        # fall back to default double-buffered pipelining if pipeline hints
        # are rejected by this jax/Mosaic version
        out = _call(False)

    if b_pad != B:
        out = out[:B]
    if unsqueezed:
        out = out[0]
    return out, jnp.ones_like(out)               # Dummy.mean, Dummy.stddev


# ----------------------------- reference ---------------------------------- #
def _reference(x, params):
    unsqueezed = x.ndim == 1
    if unsqueezed:
        x = x[None, :]
    h = x @ params["w1"] + params["b1"]
    h = jnp.where(h >= 0.0, h, 0.25 * h)
    y = h @ params["w2"] + params["b2"]
    if "wp" in params:
        y = y + x @ params["wp"]
    else:
        y = y + x
    if unsqueezed:
        y = y[0]
    return y


if __name__ == "__main__":
    key = jax.random.PRNGKey(0)

    # --- projection branch (obs_dim != output_dim) ---
    traj_encoder_obs_dim = 16
    output_dim = 32
    batch = 8

    kx, kp, kq, kb = jax.random.split(key, 4)
    x = jax.random.normal(kx, (batch, traj_encoder_obs_dim), jnp.float32)
    params = init_params(kp, traj_encoder_obs_dim, output_dim)

    mean, stddev = traj_encoder_skip_conn(x, params)
    mean = jax.block_until_ready(mean)
    stddev = jax.block_until_ready(stddev)

    ref = _reference(x, params)
    assert mean.shape == (batch, output_dim)
    assert stddev.shape == (batch, output_dim)
    assert jnp.allclose(mean, ref, atol=1e-5, rtol=1e-5)
    assert jnp.all(stddev == 1.0)

    # --- 1-D (unsqueeze/squeeze) path ---
    x1 = jax.random.normal(kx, (traj_encoder_obs_dim,), jnp.float32)
    m1, s1 = traj_encoder_skip_conn(x1, params)
    m1 = jax.block_until_ready(m1)
    assert m1.shape == (output_dim,)
    assert jnp.allclose(m1, _reference(x1, params), atol=1e-5, rtol=1e-5)

    # --- identity-skip branch (obs_dim == output_dim) ---
    params_id = init_params(kq, output_dim, output_dim)
    x_id = jax.random.normal(kx, (batch, output_dim), jnp.float32)
    m_id, s_id = traj_encoder_skip_conn(x_id, params_id)
    m_id = jax.block_until_ready(m_id)
    assert m_id.shape == (batch, output_dim)
    assert jnp.allclose(m_id, _reference(x_id, params_id), atol=1e-5, rtol=1e-5)
    assert jnp.all(s_id == 1.0)

    # --- multi-step grid (batch padding + 2 parallel grid steps) ---
    x_big = jax.random.normal(kb, (50, traj_encoder_obs_dim), jnp.float32)
    m_big, s_big = traj_encoder_skip_conn(x_big, params)
    m_big = jax.block_until_ready(m_big)
    assert m_big.shape == (50, output_dim)
    assert jnp.allclose(m_big, _reference(x_big, params), atol=1e-5, rtol=1e-5)

    print("KERNEL_OK")
</pallas_src>

<mosaic_0001>
module attributes {stable_mosaic.version = 11 : i64} {
  func.func @_traj_encoder_kernel(%arg0: i32, %arg1: memref<8x16xf32, #tpu.memory_space<vmem>>, %arg2: memref<16x256xf32, #tpu.memory_space<vmem>>, %arg3: memref<1x128xf32, #tpu.memory_space<vmem>>, %arg4: memref<128x128xf32, #tpu.memory_space<vmem>>, %arg5: memref<1x128xf32, #tpu.memory_space<vmem>>, %arg6: memref<8x32xf32, #tpu.memory_space<vmem>>) attributes {dimension_semantics = [#tpu.dimension_semantics<parallel>], iteration_bounds = array<i64: 1>, scalar_prefetch = 0 : i64, scratch_operands = 0 : i64, tpu.core_type = #tpu.core_type<tc>, window_params = [{transform_indices = @transform_0, window_bounds = array<i64: 8, 16>}, {pipeline_mode = #tpu.pipeline_mode<synchronous>, transform_indices = @transform_1, window_bounds = array<i64: 16, 256>}, {pipeline_mode = #tpu.pipeline_mode<synchronous>, transform_indices = @transform_2, window_bounds = array<i64: 1, 128>}, {pipeline_mode = #tpu.pipeline_mode<synchronous>, transform_indices = @transform_3, window_bounds = array<i64: 128, 128>}, {pipeline_mode = #tpu.pipeline_mode<synchronous>, transform_indices = @transform_4, window_bounds = array<i64: 1, 128>}, {transform_indices = @transform_5, window_bounds = array<i64: 8, 32>}]} {
    %c0 = arith.constant 0 : index
    %c0_0 = arith.constant 0 : index
    %0 = vector.load %arg1[%c0, %c0_0] : memref<8x16xf32, #tpu.memory_space<vmem>>, vector<8x16xf32>
    %c0_1 = arith.constant 0 : index
    %c0_2 = arith.constant 0 : index
    %1 = vector.load %arg2[%c0_1, %c0_2] : memref<16x256xf32, #tpu.memory_space<vmem>>, vector<16x256xf32>
    %cst = arith.constant dense<0.000000e+00> : vector<8x256xf32>
    %2 = tpu.matmul %0, %1, %cst {dimension_numbers = #tpu.dot_dimension_numbers<[1], [0], [0], [1], [0, 0, 1, 1], [], []>} : vector<8x16xf32>, vector<16x256xf32>, vector<8x256xf32> -> vector<8x256xf32>
    %3 = vector.extract_strided_slice %2 {offsets = [0, 0], sizes = [8, 128], strides = [1, 1]} : vector<8x256xf32> to vector<8x128xf32>
    %c0_3 = arith.constant 0 : index
    %c0_4 = arith.constant 0 : index
    %4 = vector.load %arg3[%c0_3, %c0_4] : memref<1x128xf32, #tpu.memory_space<vmem>>, vector<1x128xf32>
    %5 = vector.broadcast %4 : vector<1x128xf32> to vector<8x128xf32>
    %6 = arith.addf %3, %5 : vector<8x128xf32>
    %7 = vector.extract_strided_slice %2 {offsets = [0, 128], sizes = [8, 128], strides = [1, 1]} : vector<8x256xf32> to vector<8x128xf32>
    %cst_5 = arith.constant 0.000000e+00 : f32
    %8 = vector.broadcast %cst_5 : f32 to vector<8x128xf32>
    %9 = arith.cmpf oge, %6, %8 : vector<8x128xf32>
    %cst_6 = arith.constant 2.500000e-01 : f32
    %10 = vector.broadcast %cst_6 : f32 to vector<8x128xf32>
    %11 = arith.mulf %10, %6 : vector<8x128xf32>
    %12 = arith.select %9, %6, %11 : vector<8x128xi1>, vector<8x128xf32>
    %c0_7 = arith.constant 0 : index
    %c0_8 = arith.constant 0 : index
    %13 = vector.load %arg4[%c0_7, %c0_8] : memref<128x128xf32, #tpu.memory_space<vmem>>, vector<128x128xf32>
    %cst_9 = arith.constant dense<0.000000e+00> : vector<8x128xf32>
    %14 = tpu.matmul %12, %13, %cst_9 {dimension_numbers = #tpu.dot_dimension_numbers<[1], [0], [0], [1], [0, 0, 1, 1], [], []>} : vector<8x128xf32>, vector<128x128xf32>, vector<8x128xf32> -> vector<8x128xf32>
    %c0_10 = arith.constant 0 : index
    %c0_11 = arith.constant 0 : index
    %15 = vector.load %arg5[%c0_10, %c0_11] : memref<1x128xf32, #tpu.memory_space<vmem>>, vector<1x128xf32>
    %16 = vector.broadcast %15 : vector<1x128xf32> to vector<8x128xf32>
    %17 = arith.addf %14, %16 : vector<8x128xf32>
    %18 = arith.addf %17, %7 : vector<8x128xf32>
    %19 = vector.extract_strided_slice %18 {offsets = [0, 0], sizes = [8, 32], strides = [1, 1]} : vector<8x128xf32> to vector<8x32xf32>
    %c0_12 = arith.constant 0 : index
    %c0_13 = arith.constant 0 : index
    %20 = vector.load %arg6[%c0_12, %c0_13] : memref<8x32xf32, #tpu.memory_space<vmem>>, vector<8x32xf32>
    tpu.vector_store %arg6[%c0_12, %c0_13], %19 {strides = array<i32>} : memref<8x32xf32, #tpu.memory_space<vmem>>, vector<8x32xf32>,
    return
  }
  func.func @transform_0(%arg0: i32) -> (i32, i32) {
    %c0_i32 = arith.constant 0 : i32
    %c0_i32_0 = arith.constant 0 : i32
    return %arg0, %c0_i32 : i32, i32
  }
  func.func @transform_1(%arg0: i32) -> (i32, i32) {
    %c0_i32 = arith.constant 0 : i32
    %c0_i32_0 = arith.constant 0 : i32
    %c0_i32_1 = arith.constant 0 : i32
    return %c0_i32, %c0_i32_0 : i32, i32
  }
  func.func @transform_2(%arg0: i32) -> (i32, i32) {
    %c0_i32 = arith.constant 0 : i32
    %c0_i32_0 = arith.constant 0 : i32
    %c0_i32_1 = arith.constant 0 : i32
    return %c0_i32, %c0_i32_0 : i32, i32
  }
  func.func @transform_3(%arg0: i32) -> (i32, i32) {
    %c0_i32 = arith.constant 0 : i32
    %c0_i32_0 = arith.constant 0 : i32
    %c0_i32_1 = arith.constant 0 : i32
    return %c0_i32, %c0_i32_0 : i32, i32
  }
  func.func @transform_4(%arg0: i32) -> (i32, i32) {
    %c0_i32 = arith.constant 0 : i32
    %c0_i32_0 = arith.constant 0 : i32
    %c0_i32_1 = arith.constant 0 : i32
    return %c0_i32, %c0_i32_0 : i32, i32
  }
  func.func @transform_5(%arg0: i32) -> (i32, i32) {
    %c0_i32 = arith.constant 0 : i32
    %c0_i32_0 = arith.constant 0 : i32
    return %arg0, %c0_i32 : i32, i32
  }
}

module attributes {stable_mosaic.version = 11 : i64} {
  func.func @_traj_encoder_kernel(%arg0: i32, %arg1: memref<8x16xf32, #tpu.memory_space<vmem>>, %arg2: memref<16x256xf32, #tpu.memory_space<vmem>>, %arg3: memref<1x128xf32, #tpu.memory_space<vmem>>, %arg4: memref<128x128xf32, #tpu.memory_space<vmem>>, %arg5: memref<1x128xf32, #tpu.memory_space<vmem>>, %arg6: memref<8x32xf32, #tpu.memory_space<vmem>>) attributes {dimension_semantics = [#tpu.dimension_semantics<parallel>], iteration_bounds = array<i64: 1>, scalar_prefetch = 0 : i64, scratch_operands = 0 : i64, tpu.core_type = #tpu.core_type<tc>, window_params = [{transform_indices = @transform_0, window_bounds = array<i64: 8, 16>}, {pipeline_mode = #tpu.pipeline_mode<synchronous>, transform_indices = @transform_1, window_bounds = array<i64: 16, 256>}, {pipeline_mode = #tpu.pipeline_mode<synchronous>, transform_indices = @transform_2, window_bounds = array<i64: 1, 128>}, {pipeline_mode = #tpu.pipeline_mode<synchronous>, transform_indices = @transform_3, window_bounds = array<i64: 128, 128>}, {pipeline_mode = #tpu.pipeline_mode<synchronous>, transform_indices = @transform_4, window_bounds = array<i64: 1, 128>}, {transform_indices = @transform_5, window_bounds = array<i64: 8, 32>}]} {
    %c0 = arith.constant 0 : index
    %c0_0 = arith.constant 0 : index
    %0 = vector.load %arg1[%c0, %c0_0] : memref<8x16xf32, #tpu.memory_space<vmem>>, vector<8x16xf32>
    %c0_1 = arith.constant 0 : index
    %c0_2 = arith.constant 0 : index
    %1 = vector.load %arg2[%c0_1, %c0_2] : memref<16x256xf32, #tpu.memory_space<vmem>>, vector<16x256xf32>
    %cst = arith.constant dense<0.000000e+00> : vector<8x256xf32>
    %2 = tpu.matmul %0, %1, %cst {dimension_numbers = #tpu.dot_dimension_numbers<[1], [0], [0], [1], [0, 0, 1, 1], [], []>} : vector<8x16xf32>, vector<16x256xf32>, vector<8x256xf32> -> vector<8x256xf32>
    %3 = vector.extract_strided_slice %2 {offsets = [0, 0], sizes = [8, 128], strides = [1, 1]} : vector<8x256xf32> to vector<8x128xf32>
    %c0_3 = arith.constant 0 : index
    %c0_4 = arith.constant 0 : index
    %4 = vector.load %arg3[%c0_3, %c0_4] : memref<1x128xf32, #tpu.memory_space<vmem>>, vector<1x128xf32>
    %5 = vector.broadcast %4 : vector<1x128xf32> to vector<8x128xf32>
    %6 = arith.addf %3, %5 : vector<8x128xf32>
    %7 = vector.extract_strided_slice %2 {offsets = [0, 128], sizes = [8, 128], strides = [1, 1]} : vector<8x256xf32> to vector<8x128xf32>
    %cst_5 = arith.constant 0.000000e+00 : f32
    %8 = vector.broadcast %cst_5 : f32 to vector<8x128xf32>
    %9 = arith.cmpf oge, %6, %8 : vector<8x128xf32>
    %cst_6 = arith.constant 2.500000e-01 : f32
    %10 = vector.broadcast %cst_6 : f32 to vector<8x128xf32>
    %11 = arith.mulf %10, %6 : vector<8x128xf32>
    %12 = arith.select %9, %6, %11 : vector<8x128xi1>, vector<8x128xf32>
    %c0_7 = arith.constant 0 : index
    %c0_8 = arith.constant 0 : index
    %13 = vector.load %arg4[%c0_7, %c0_8] : memref<128x128xf32, #tpu.memory_space<vmem>>, vector<128x128xf32>
    %cst_9 = arith.constant dense<0.000000e+00> : vector<8x128xf32>
    %14 = tpu.matmul %12, %13, %cst_9 {dimension_numbers = #tpu.dot_dimension_numbers<[1], [0], [0], [1], [0, 0, 1, 1], [], []>} : vector<8x128xf32>, vector<128x128xf32>, vector<8x128xf32> -> vector<8x128xf32>
    %c0_10 = arith.constant 0 : index
    %c0_11 = arith.constant 0 : index
    %15 = vector.load %arg5[%c0_10, %c0_11] : memref<1x128xf32, #tpu.memory_space<vmem>>, vector<1x128xf32>
    %16 = vector.broadcast %15 : vector<1x128xf32> to vector<8x128xf32>
    %17 = arith.addf %14, %16 : vector<8x128xf32>
    %18 = arith.addf %17, %7 : vector<8x128xf32>
    %19 = vector.extract_strided_slice %18 {offsets = [0, 0], sizes = [8, 32], strides = [1, 1]} : vector<8x128xf32> to vector<8x32xf32>
    %c0_12 = arith.constant 0 : index
    %c0_13 = arith.constant 0 : index
    %20 = vector.load %arg6[%c0_12, %c0_13] : memref<8x32xf32, #tpu.memory_space<vmem>>, vector<8x32xf32>
    tpu.vector_store %arg6[%c0_12, %c0_13], %19 {strides = array<i32>} : memref<8x32xf32, #tpu.memory_space<vmem>>, vector<8x32xf32>,
    return
  }
  func.func @transform_0(%arg0: i32) -> (i32, i32) {
    %c0_i32 = arith.constant 0 : i32
    %c0_i32_0 = arith.constant 0 : i32
    return %arg0, %c0_i32 : i32, i32
  }
  func.func @transform_1(%arg0: i32) -> (i32, i32) {
    %c0_i32 = arith.constant 0 : i32
    %c0_i32_0 = arith.constant 0 : i32
    %c0_i32_1 = arith.constant 0 : i32
    return %c0_i32, %c0_i32_0 : i32, i32
  }
  func.func @transform_2(%arg0: i32) -> (i32, i32) {
    %c0_i32 = arith.constant 0 : i32
    %c0_i32_0 = arith.constant 0 : i32
    %c0_i32_1 = arith.constant 0 : i32
    return %c0_i32, %c0_i32_0 : i32, i32
  }
  func.func @transform_3(%arg0: i32) -> (i32, i32) {
    %c0_i32 = arith.constant 0 : i32
    %c0_i32_0 = arith.constant 0 : i32
    %c0_i32_1 = arith.constant 0 : i32
    return %c0_i32, %c0_i32_0 : i32, i32
  }
  func.func @transform_4(%arg0: i32) -> (i32, i32) {
    %c0_i32 = arith.constant 0 : i32
    %c0_i32_0 = arith.constant 0 : i32
    %c0_i32_1 = arith.constant 0 : i32
    return %c0_i32, %c0_i32_0 : i32, i32
  }
  func.func @transform_5(%arg0: i32) -> (i32, i32) {
    %c0_i32 = arith.constant 0 : i32
    %c0_i32_0 = arith.constant 0 : i32
    return %arg0, %c0_i32 : i32, i32
  }
}

</mosaic_0001>

<bundles_post_ra>
// kernel: tpu_custom_call.1
= control target key start
LH: loop header
LB: loop body
LE: loop exit
PB: predicated region body
PF: predicated region fallthrough
CT: control target
= control target key end

     0   :  { %10 = vsyncpa [#allocation3], 0  ;;  %s472_s0 = inlined_call_operand.hbm [shape: f32[8,16], index: 0, kind: input, shape index: {}]   ;;  %s473_s1 = inlined_call_operand.hbm [shape: f32[16,256], index: 1, kind: input, shape index: {}]   ;;  %s474_s2 = inlined_call_operand.vmem [shape: f32[1,128], index: 2, kind: input, shape index: {}]   ;;  %s475_s3 = inlined_call_operand.hbm [shape: f32[128,128], index: 3, kind: input, shape index: {}]   ;;  %s476_s4 = inlined_call_operand.vmem [shape: f32[1,128], index: 4, kind: input, shape index: {}]   ;;  %s477_s5 = inlined_call_operand.hbm [shape: f32[8,32], index: 5, kind: output, shape index: {}]  }
   0x1   :  { %11 = vsyncpa [#allocation6], 0 }
   0x2   :  { %12 = vsyncpa [#allocation4], 0  ;;  %s414_s18 = smov [#allocation5]  }
   0x3   :  { %s28_s19 = sshll.u32 %s414_s18, 4  ;;  %s29_s19 = int_to_ptr.vmem [resolvable:$true] %s28_s19 }
   0x4   :  { %s336_s20 = scalar_lea.vmem %s29_s19, 512  ;;  %p341_p1 = scmp.lt.s32.totalorder %s29_s19, %s29_s19 }
   0x5   :  { %p337_p0 = scmp.ne.s32.totalorder %s29_s19, %s336_s20  ;;  %p342_p2 = scmp.lt.s32.totalorder %s336_s20, %s336_s20 }
   0x7   :  { %p343_p3 = por %p342_p2, %p341_p1 }
   0x9   :  { %p344_p4 = pnand %p343_p3, %p337_p0 }
   0xb   :  { %347 = shalt.err (!%p344_p4)
}
   0xc   :  { %s415_s21 = smov 256   ;;  %s416_s22 = smov 16  }
   0xd   :  { %34 = dma.hbm_to_vmem [thread:$0]  %s473_s1, 512, %s29_s19, [#allocation6], %s415_s21, %s415_s21, %s416_s22  }
   0xe   :  { %s417_s25 = smov [#allocation2]   ;;  %s418_s27 = smov [#allocation7]  }
   0xf   :  { %s19_s26 = sshll.u32 %s417_s25, 4  ;;  %s42_s28 = sshll.u32 %s418_s27, 4  ;;  %s20_s26 = int_to_ptr.vmem [resolvable:$true] %s19_s26  ;;  %s43_s28 = int_to_ptr.vmem [resolvable:$true] %s42_s28 }
  0x10   :  { %s356_s29 = scalar_lea.vmem %s20_s26, 128  ;;  %p361_p6 = scmp.lt.s32.totalorder %s20_s26, %s20_s26 }
  0x11   :  { %p357_p5 = scmp.ne.s32.totalorder %s20_s26, %s356_s29  ;;  %p362_p7 = scmp.lt.s32.totalorder %s356_s29, %s356_s29 }
  0x13   :  { %p363_p8 = por %p362_p7, %p361_p6 }
  0x15   :  { %p364_p9 = pnand %p363_p8, %p357_p5 }
  0x17   :  { %367 = shalt.err (!%p364_p9)
}
  0x18   :  { %22 = dma.hbm_to_vmem [thread:$0]  %s472_s0, 128, %s20_s26, [#allocation3]  }
  0x19   :  { %s376_s7 = scalar_lea.vmem %s43_s28, 2048  ;;  %p381_p11 = scmp.lt.s32.totalorder %s43_s28, %s43_s28 }
  0x1a   :  { %p377_p10 = scmp.ne.s32.totalorder %s43_s28, %s376_s7  ;;  %p382_p12 = scmp.lt.s32.totalorder %s376_s7, %s376_s7 }
  0x1c   :  { %p383_p13 = por %p382_p12, %p381_p11 }
  0x1e   :  { %p384_p0 = pnand %p383_p13, %p377_p10 }
  0x20   :  { %387 = shalt.err (!%p384_p0)
}
  0x21   :  { %s419_s1 = smov 128   ;;  %s420_s8 = smov 8  }
  0x22   :  { %48 = dma.hbm_to_vmem [thread:$0]  %s475_s3, 2048, %s43_s28, [#allocation6], %s419_s1, %s419_s1, %s420_s8  }
  0x23   :  { %408 = dma.done.wait [#allocation3], 128  }
  0x24   :  { %409 = vsyncadd [#allocation3], 4294967168 }
  0x25   :  { %410 = dma.done.wait [#allocation6], 2560  }
  0x26   :  { %411 = vsyncadd [#allocation6], 4294964736  ;;  %v421_v0 = vmov 0.0   ;;  %v64_v1 = vld [vmem:[#allocation5 + $0x18] sm:$0xff]  ;;  %v63_v2 = vld [vmem:[#allocation5 + $0x10] sm:$0xff]  ;;  %vm65_vm0 = vcmask 130048  }
  0x27   :  { %133 = vmatprep.mubr.f32.mxu0 %v421_v0  ;;  %283 = vmatprep.subr.mxu1 %v421_v0  ;;  %v62_v3 = vld [vmem:[#allocation5 + $0x8] sm:$0xff]  ;;  %v61_v4 = vld [vmem:[#allocation5] sm:$0xff]  ;;  %v166_v5 = vld [vmem:[#allocation7 + $0x78] sm:$0xff]  ;;  %vm422_vm1 = vmmov 0   ;;  %s423_s13 = smov [#allocation8]   ;;  %vm245_vm3 = vcmask 261120  }
  0x28   :  { %97 = vmatprep.subr.mxu0 %v64_v1  ;;  %v60_v6 = vld [vmem:[#allocation2] sm:$0xff]  ;;  %284 = vmatpush3.msra.mxu1 %v166_v5  ;;  %v165_v7 = vld [vmem:[#allocation7 + $0x70] sm:$0xff]  ;;  %v164_v8 = vld [vmem:[#allocation7 + $0x68] sm:$0xff]  ;;  %s253_s14 = sshll.u32 %s423_s13, 4  ;;  %s254_s14 = int_to_ptr.vmem [resolvable:$true] %s253_s14 }
  0x29   :  { %98 = vmatpush1.msra.mxu0 %v63_v2  ;;  %285 = vmatprep.subr.mxu1 %v421_v0  ;;  %v163_v9 = vld [vmem:[#allocation7 + $0x60] sm:$0xff]  ;;  %v162_v10 = vld [vmem:[#allocation7 + $0x58] sm:$0xff]  ;;  %v161_v11 = vld [vmem:[#allocation7 + $0x50] sm:$0xff]  ;;  %p393_p2 = scmp.lt.s32.totalorder %s254_s14, %s254_s14 }
  0x2a   :  { %99 = vmatprep.subr.mxu0 %v62_v3  ;;  %286 = vmatpush3.msra.mxu1 %v165_v7  ;;  %v160_v12 = vld [vmem:[#allocation7 + $0x48] sm:$0xff]  ;;  %v159_v13 = vld [vmem:[#allocation7 + $0x40] sm:$0xff]  ;;  %v158_v14 = vld [vmem:[#allocation7 + $0x38] sm:$0xff] }
  0x2b   :  { %100 = vmatpush1.msra.mxu0 %v61_v4  ;;  %287 = vmatprep.subr.mxu1 %v421_v0  ;;  %v157_v15 = vld [vmem:[#allocation7 + $0x30] sm:$0xff]  ;;  %v156_v16 = vld [vmem:[#allocation7 + $0x28] sm:$0xff]  ;;  %v155_v17 = vld [vmem:[#allocation7 + $0x20] sm:$0xff] }
  0x2c   :  { %263 = vmatmul.mubr.msk.f32.vlgmr.msra.gmra.mxu0 %vm65_vm0, %v60_v6  ;;  %288 = vmatpush3.msra.mxu1 %v164_v8  ;;  %v154_v18 = vld [vmem:[#allocation7 + $0x18] sm:$0xff]  ;;  %v153_v19 = vld [vmem:[#allocation7 + $0x10] sm:$0xff]  ;;  %v152_v20 = vld [vmem:[#allocation7 + $0x8] sm:$0xff] }
  0x2d   :  { %289 = vmatprep.subr.mxu1 %v421_v0  ;;  %v151_v21 = vld [vmem:[#allocation7] sm:$0xff]  ;;  %315 = vmatprep.mubr.msk.f32.mxu1 %vm422_vm1, %v421_v0  ;;  %v264_v22 = vld [vmem:[%s474_s2] ss:$0 sm:$0xff]  ;;  %s388_s2 = scalar_lea.vmem %s254_s14, 128 }
  0x2e   :  { %290 = vmatpush3.msra.mxu1 %v163_v9  ;;  %v265_v27 = vld [vmem:[%s476_s4] ss:$0 sm:$0xff]  ;;  %p389_p1 = scmp.ne.s32.totalorder %s254_s14, %s388_s2  ;;  %p394_p3 = scmp.lt.s32.totalorder %s388_s2, %s388_s2 }
  0x2f   :  { %291 = vmatprep.subr.mxu1 %v421_v0 }
  0x30   :  { %292 = vmatpush3.msra.mxu1 %v162_v10  ;;  %p395_p4 = por %p394_p3, %p393_p2 }
  0x31   :  { %293 = vmatprep.subr.mxu1 %v421_v0 }
  0x32   :  { %294 = vmatpush3.msra.mxu1 %v161_v11  ;;  %p396_p5 = pnand %p395_p4, %p389_p1 }
  0x33   :  { %295 = vmatprep.subr.mxu1 %v421_v0 }
  0x34   :  { %296 = vmatpush3.msra.mxu1 %v160_v12 }
  0x35   :  { %297 = vmatprep.subr.mxu1 %v421_v0 }
  0x36   :  { %298 = vmatpush3.msra.mxu1 %v159_v13 }
  0x37   :  { %299 = vmatprep.subr.mxu1 %v421_v0 }
  0x38   :  { %300 = vmatpush3.msra.mxu1 %v158_v14 }
  0x39   :  { %301 = vmatprep.subr.mxu1 %v421_v0 }
  0x3a   :  { %302 = vmatpush3.msra.mxu1 %v157_v15 }
  0x3b   :  { %303 = vmatprep.subr.mxu1 %v421_v0 }
  0x3c   :  { %304 = vmatpush3.msra.mxu1 %v156_v16 }
  0x3d   :  { %305 = vmatprep.subr.mxu1 %v421_v0 }
  0x3e   :  { %306 = vmatpush3.msra.mxu1 %v155_v17 }
  0x3f   :  { %307 = vmatprep.subr.mxu1 %v421_v0 }
  0x40   :  { %308 = vmatpush3.msra.mxu1 %v154_v18 }
  0x41   :  { %309 = vmatprep.subr.mxu1 %v421_v0 }
  0x42   :  { %310 = vmatpush3.msra.mxu1 %v153_v19 }
  0x43   :  { %311 = vmatprep.subr.mxu1 %v421_v0 }
  0x44   :  { %312 = vmatpush3.msra.mxu1 %v152_v20 }
  0x45   :  { %313 = vmatprep.subr.mxu1 %v421_v0 }
  0x46   :  { %314 = vmatpush3.msra.mxu1 %v151_v21 }
  0xec   :  { %v135_v23 = vpop.f32.mrf.mxu0 }
  0xed   :  { %v147_v24 = vadd.f32 %v264_v22, %v135_v23 }
  0xee   :  { %v137_v30 = vpop.f32.mrf.mxu0 }
  0xef   :  { %v149_v25 = vmul.f32 0.25, %v147_v24  ;;  %vm148_vm2 = vcmp.ge.f32.partialorder %v147_v24, 0.0 }
  0xf1   :  { %v150_v26 = vsel %vm148_vm2, %v147_v24, %v149_v25 }
  0xf2   :  { %316 = vmatmul.mubr.f32.vlgmr.msra.gmra.mxu1 %v150_v26 }
 0x1b2   :  { %v240_v28 = vpop.f32.mrf.mxu1 }
 0x1b3   :  { %v241_v29 = vadd.f32 %v265_v27, %v240_v28 }
 0x1b4   :  { %v317_v31 = vpop.f32.mrf.mxu1 }
 0x1b5   :  { %v244_v32 = vadd.f32 %v241_v29, %v137_v30 }
 0x1b7   :  { %246 = vst.msk [vmem:[#allocation8] sm:$0xff] %vm245_vm3, %v244_v32 }
 0x1b8   :  { %399 = shalt.err (!%p396_p5)
}
 0x1b9   :  { %256 = dma.vmem_to_hbm [thread:$0]  %s254_s14, 128, %s477_s5, [#allocation4]  }
 0x1ba   :  { %412 = dma.done.wait [#allocation4], 128  }
 0x1bb   :  { %413 = vsyncadd [#allocation4], 4294967168 }
 0x1bc   :  { %260 = vsyncpa [#allocation3], 1 }
 0x1bd   :  { %261 = vsyncpa [#allocation6], 1 }
 0x1be   :  { %262 = vsyncpa [#allocation4], 1 }

// kernel: tpu_custom_call.1
= control target key start
LH: loop header
LB: loop body
LE: loop exit
PB: predicated region body
PF: predicated region fallthrough
CT: control target
= control target key end

     0   :  { %10 = vsyncpa [#allocation3], 0  ;;  %s472_s0 = inlined_call_operand.hbm [shape: f32[8,16], index: 0, kind: input, shape index: {}]   ;;  %s473_s1 = inlined_call_operand.hbm [shape: f32[16,256], index: 1, kind: input, shape index: {}]   ;;  %s474_s2 = inlined_call_operand.vmem [shape: f32[1,128], index: 2, kind: input, shape index: {}]   ;;  %s475_s3 = inlined_call_operand.hbm [shape: f32[128,128], index: 3, kind: input, shape index: {}]   ;;  %s476_s4 = inlined_call_operand.vmem [shape: f32[1,128], index: 4, kind: input, shape index: {}]   ;;  %s477_s5 = inlined_call_operand.hbm [shape: f32[8,32], index: 5, kind: output, shape index: {}]  }
   0x1   :  { %11 = vsyncpa [#allocation6], 0 }
   0x2   :  { %12 = vsyncpa [#allocation4], 0  ;;  %s414_s18 = smov [#allocation5]  }
   0x3   :  { %s28_s19 = sshll.u32 %s414_s18, 4  ;;  %s29_s19 = int_to_ptr.vmem [resolvable:$true] %s28_s19 }
   0x4   :  { %s336_s20 = scalar_lea.vmem %s29_s19, 512  ;;  %p341_p1 = scmp.lt.s32.totalorder %s29_s19, %s29_s19 }
   0x5   :  { %p337_p0 = scmp.ne.s32.totalorder %s29_s19, %s336_s20  ;;  %p342_p2 = scmp.lt.s32.totalorder %s336_s20, %s336_s20 }
   0x7   :  { %p343_p3 = por %p342_p2, %p341_p1 }
   0x9   :  { %p344_p4 = pnand %p343_p3, %p337_p0 }
   0xb   :  { %347 = shalt.err (!%p344_p4)
}
   0xc   :  { %s415_s21 = smov 256   ;;  %s416_s22 = smov 16  }
   0xd   :  { %34 = dma.hbm_to_vmem [thread:$0]  %s473_s1, 512, %s29_s19, [#allocation6], %s415_s21, %s415_s21, %s416_s22  }
   0xe   :  { %s417_s25 = smov [#allocation2]   ;;  %s418_s27 = smov [#allocation7]  }
   0xf   :  { %s19_s26 = sshll.u32 %s417_s25, 4  ;;  %s42_s28 = sshll.u32 %s418_s27, 4  ;;  %s20_s26 = int_to_ptr.vmem [resolvable:$true] %s19_s26  ;;  %s43_s28 = int_to_ptr.vmem [resolvable:$true] %s42_s28 }
  0x10   :  { %s356_s29 = scalar_lea.vmem %s20_s26, 128  ;;  %p361_p6 = scmp.lt.s32.totalorder %s20_s26, %s20_s26 }
  0x11   :  { %p357_p5 = scmp.ne.s32.totalorder %s20_s26, %s356_s29  ;;  %p362_p7 = scmp.lt.s32.totalorder %s356_s29, %s356_s29 }
  0x13   :  { %p363_p8 = por %p362_p7, %p361_p6 }
  0x15   :  { %p364_p9 = pnand %p363_p8, %p357_p5 }
  0x17   :  { %367 = shalt.err (!%p364_p9)
}
  0x18   :  { %22 = dma.hbm_to_vmem [thread:$0]  %s472_s0, 128, %s20_s26, [#allocation3]  }
  0x19   :  { %s376_s7 = scalar_lea.vmem %s43_s28, 2048  ;;  %p381_p11 = scmp.lt.s32.totalorder %s43_s28, %s43_s28 }
  0x1a   :  { %p377_p10 = scmp.ne.s32.totalorder %s43_s28, %s376_s7  ;;  %p382_p12 = scmp.lt.s32.totalorder %s376_s7, %s376_s7 }
  0x1c   :  { %p383_p13 = por %p382_p12, %p381_p11 }
  0x1e   :  { %p384_p0 = pnand %p383_p13, %p377_p10 }
  0x20   :  { %387 = shalt.err (!%p384_p0)
}
  0x21   :  { %s419_s1 = smov 128   ;;  %s420_s8 = smov 8  }
  0x22   :  { %48 = dma.hbm_to_vmem [thread:$0]  %s475_s3, 2048, %s43_s28, [#allocation6], %s419_s1, %s419_s1, %s420_s8  }
  0x23   :  { %408 = dma.done.wait [#allocation3], 128  }
  0x24   :  { %409 = vsyncadd [#allocation3], 4294967168 }
  0x25   :  { %410 = dma.done.wait [#allocation6], 2560  }
  0x26   :  { %411 = vsyncadd [#allocation6], 4294964736  ;;  %v421_v0 = vmov 0.0   ;;  %v64_v1 = vld [vmem:[#allocation5 + $0x18] sm:$0xff]  ;;  %v63_v2 = vld [vmem:[#allocation5 + $0x10] sm:$0xff]  ;;  %vm65_vm0 = vcmask 130048  }
  0x27   :  { %133 = vmatprep.mubr.f32.mxu0 %v421_v0  ;;  %283 = vmatprep.subr.mxu1 %v421_v0  ;;  %v62_v3 = vld [vmem:[#allocation5 + $0x8] sm:$0xff]  ;;  %v61_v4 = vld [vmem:[#allocation5] sm:$0xff]  ;;  %v166_v5 = vld [vmem:[#allocation7 + $0x78] sm:$0xff]  ;;  %vm422_vm1 = vmmov 0   ;;  %s423_s13 = smov [#allocation8]   ;;  %vm245_vm3 = vcmask 261120  }
  0x28   :  { %97 = vmatprep.subr.mxu0 %v64_v1  ;;  %v60_v6 = vld [vmem:[#allocation2] sm:$0xff]  ;;  %284 = vmatpush3.msra.mxu1 %v166_v5  ;;  %v165_v7 = vld [vmem:[#allocation7 + $0x70] sm:$0xff]  ;;  %v164_v8 = vld [vmem:[#allocation7 + $0x68] sm:$0xff]  ;;  %s253_s14 = sshll.u32 %s423_s13, 4  ;;  %s254_s14 = int_to_ptr.vmem [resolvable:$true] %s253_s14 }
  0x29   :  { %98 = vmatpush1.msra.mxu0 %v63_v2  ;;  %285 = vmatprep.subr.mxu1 %v421_v0  ;;  %v163_v9 = vld [vmem:[#allocation7 + $0x60] sm:$0xff]  ;;  %v162_v10 = vld [vmem:[#allocation7 + $0x58] sm:$0xff]  ;;  %v161_v11 = vld [vmem:[#allocation7 + $0x50] sm:$0xff]  ;;  %p393_p2 = scmp.lt.s32.totalorder %s254_s14, %s254_s14 }
  0x2a   :  { %99 = vmatprep.subr.mxu0 %v62_v3  ;;  %286 = vmatpush3.msra.mxu1 %v165_v7  ;;  %v160_v12 = vld [vmem:[#allocation7 + $0x48] sm:$0xff]  ;;  %v159_v13 = vld [vmem:[#allocation7 + $0x40] sm:$0xff]  ;;  %v158_v14 = vld [vmem:[#allocation7 + $0x38] sm:$0xff] }
  0x2b   :  { %100 = vmatpush1.msra.mxu0 %v61_v4  ;;  %287 = vmatprep.subr.mxu1 %v421_v0  ;;  %v157_v15 = vld [vmem:[#allocation7 + $0x30] sm:$0xff]  ;;  %v156_v16 = vld [vmem:[#allocation7 + $0x28] sm:$0xff]  ;;  %v155_v17 = vld [vmem:[#allocation7 + $0x20] sm:$0xff] }
  0x2c   :  { %263 = vmatmul.mubr.msk.f32.vlgmr.msra.gmra.mxu0 %vm65_vm0, %v60_v6  ;;  %288 = vmatpush3.msra.mxu1 %v164_v8  ;;  %v154_v18 = vld [vmem:[#allocation7 + $0x18] sm:$0xff]  ;;  %v153_v19 = vld [vmem:[#allocation7 + $0x10] sm:$0xff]  ;;  %v152_v20 = vld [vmem:[#allocation7 + $0x8] sm:$0xff] }
  0x2d   :  { %289 = vmatprep.subr.mxu1 %v421_v0  ;;  %v151_v21 = vld [vmem:[#allocation7] sm:$0xff]  ;;  %315 = vmatprep.mubr.msk.f32.mxu1 %vm422_vm1, %v421_v0  ;;  %v264_v22 = vld [vmem:[%s474_s2] ss:$0 sm:$0xff]  ;;  %s388_s2 = scalar_lea.vmem %s254_s14, 128 }
  0x2e   :  { %290 = vmatpush3.msra.mxu1 %v163_v9  ;;  %v265_v27 = vld [vmem:[%s476_s4] ss:$0 sm:$0xff]  ;;  %p389_p1 = scmp.ne.s32.totalorder %s254_s14, %s388_s2  ;;  %p394_p3 = scmp.lt.s32.totalorder %s388_s2, %s388_s2 }
  0x2f   :  { %291 = vmatprep.subr.mxu1 %v421_v0 }
  0x30   :  { %292 = vmatpush3.msra.mxu1 %v162_v10  ;;  %p395_p4 = por %p394_p3, %p393_p2 }
  0x31   :  { %293 = vmatprep.subr.mxu1 %v421_v0 }
  0x32   :  { %294 = vmatpush3.msra.mxu1 %v161_v11  ;;  %p396_p5 = pnand %p395_p4, %p389_p1 }
  0x33   :  { %295 = vmatprep.subr.mxu1 %v421_v0 }
  0x34   :  { %296 = vmatpush3.msra.mxu1 %v160_v12 }
  0x35   :  { %297 = vmatprep.subr.mxu1 %v421_v0 }
  0x36   :  { %298 = vmatpush3.msra.mxu1 %v159_v13 }
  0x37   :  { %299 = vmatprep.subr.mxu1 %v421_v0 }
  0x38   :  { %300 = vmatpush3.msra.mxu1 %v158_v14 }
  0x39   :  { %301 = vmatprep.subr.mxu1 %v421_v0 }
  0x3a   :  { %302 = vmatpush3.msra.mxu1 %v157_v15 }
  0x3b   :  { %303 = vmatprep.subr.mxu1 %v421_v0 }
  0x3c   :  { %304 = vmatpush3.msra.mxu1 %v156_v16 }
  0x3d   :  { %305 = vmatprep.subr.mxu1 %v421_v0 }
  0x3e   :  { %306 = vmatpush3.msra.mxu1 %v155_v17 }
  0x3f   :  { %307 = vmatprep.subr.mxu1 %v421_v0 }
  0x40   :  { %308 = vmatpush3.msra.mxu1 %v154_v18 }
  0x41   :  { %309 = vmatprep.subr.mxu1 %v421_v0 }
  0x42   :  { %310 = vmatpush3.msra.mxu1 %v153_v19 }
  0x43   :  { %311 = vmatprep.subr.mxu1 %v421_v0 }
  0x44   :  { %312 = vmatpush3.msra.mxu1 %v152_v20 }
  0x45   :  { %313 = vmatprep.subr.mxu1 %v421_v0 }
  0x46   :  { %314 = vmatpush3.msra.mxu1 %v151_v21 }
  0xec   :  { %v135_v23 = vpop.f32.mrf.mxu0 }
  0xed   :  { %v147_v24 = vadd.f32 %v264_v22, %v135_v23 }
  0xee   :  { %v137_v30 = vpop.f32.mrf.mxu0 }
  0xef   :  { %v149_v25 = vmul.f32 0.25, %v147_v24  ;;  %vm148_vm2 = vcmp.ge.f32.partialorder %v147_v24, 0.0 }
  0xf1   :  { %v150_v26 = vsel %vm148_vm2, %v147_v24, %v149_v25 }
  0xf2   :  { %316 = vmatmul.mubr.f32.vlgmr.msra.gmra.mxu1 %v150_v26 }
 0x1b2   :  { %v240_v28 = vpop.f32.mrf.mxu1 }
 0x1b3   :  { %v241_v29 = vadd.f32 %v265_v27, %v240_v28 }
 0x1b4   :  { %v317_v31 = vpop.f32.mrf.mxu1 }
 0x1b5   :  { %v244_v32 = vadd.f32 %v241_v29, %v137_v30 }
 0x1b7   :  { %246 = vst.msk [vmem:[#allocation8] sm:$0xff] %vm245_vm3, %v244_v32 }
 0x1b8   :  { %399 = shalt.err (!%p396_p5)
}
 0x1b9   :  { %256 = dma.vmem_to_hbm [thread:$0]  %s254_s14, 128, %s477_s5, [#allocation4]  }
 0x1ba   :  { %412 = dma.done.wait [#allocation4], 128  }
 0x1bb   :  { %413 = vsyncadd [#allocation4], 4294967168 }
 0x1bc   :  { %260 = vsyncpa [#allocation3], 1 }
 0x1bd   :  { %261 = vsyncpa [#allocation6], 1 }
 0x1be   :  { %262 = vsyncpa [#allocation4], 1 }

</bundles_post_ra>
